<compile_context>
chip_gen: v7x
topology: tpu7x:2x2x1
jax: 0.10.0
libtpu: 0.0.40
codegen_flags: <defaults>
</compile_context>

<pallas_src>
import math

import numpy as np
import jax
import jax.numpy as jnp
from jax.experimental import pallas as pl
from jax.experimental.pallas import tpu as pltpu

_VMEM = pl.BlockSpec(memory_space=pltpu.MemorySpace.VMEM)


# ---------------- fused in-kernel helpers (trace-time, static loops) --------
def _softmax_list(scores):
    """Numerically stable softmax over a static Python list of (1, 1) scores."""
    smax = scores[0]
    for s in scores[1:]:
        smax = jnp.maximum(smax, s)
    es = [jnp.exp(s - smax) for s in scores]
    denom = es[0]
    for e in es[1:]:
        denom = denom + e
    return [e / denom for e in es]


def _semantic_attention(feats, W1, b1, w2):
    """HAN-style semantic attention over a static list of (N, D) views.

    score_m = mean_n( tanh(z_m @ W1 + b1) . w2 )   (mean and dot commute, so
    we reduce over nodes first: sublane reduce -> (1, D), then lane reduce)
    beta    = softmax_m(score_m)
    out     = sum_m beta_m * z_m
    The per-view matmuls are batched into one (M*N, D) @ (D, D) MXU pass.
    """
    n = feats[0].shape[0]
    z = jnp.concatenate(feats, axis=0)                                # (M*N, D)
    h = jnp.tanh(jnp.dot(z, W1, preferred_element_type=jnp.float32) + b1)
    scores = []
    for m in range(len(feats)):
        hbar = jnp.mean(h[m * n:(m + 1) * n, :], axis=0, keepdims=True)  # (1, D)
        scores.append(jnp.sum(hbar * w2, axis=-1, keepdims=True))        # (1, 1)
    betas = _softmax_list(scores)
    out = betas[0] * feats[0]
    for beta, f in zip(betas[1:], feats[1:]):
        out = out + beta * f
    return out                                                        # (N, D)


# ---------------- the single fused kernel ------------------------------------
def _make_fused_kernel(M, D, dif_idx):
    def kernel(*refs):
        xs    = refs[0 * M:1 * M]          # (N, D) each
        adjs  = refs[1 * M:2 * M]          # (N, N) each
        gWs   = refs[2 * M:3 * M]          # (D, D) each
        gbs   = refs[3 * M:4 * M]          # (1, D) each
        dWs   = refs[4 * M:5 * M]          # (D, D) each
        dbs   = refs[5 * M:6 * M]          # (1, D) each
        aW1, ab1, aw2, mW1, mb1, mw2 = refs[6 * M:6 * M + 6]
        o_ref = refs[6 * M + 6]

        feats = []
        for i in range(M):
            x = xs[i][...]                                            # (N, D)
            # Merged feature transform: one lane-dense (N, 2D) matmul.
            w_cat = jnp.concatenate([gWs[i][...], dWs[i][...]], axis=1)  # (D, 2D)
            xw = jnp.dot(x, w_cat, preferred_element_type=jnp.float32)  # (N, 2D)
            intra = (jnp.dot(adjs[i][...], xw[:, :D],
                             preferred_element_type=jnp.float32) + gbs[i][...])
            dif = (jnp.dot(adjs[dif_idx[i]][...], xw[:, D:],
                           preferred_element_type=jnp.float32) + dbs[i][...])
            # 2-view semantic attention for this attribute (stays in vregs).
            feats.append(
                _semantic_attention([intra, dif], aW1[...], ab1[...], aw2[...]))

        # Final cross-attribute semantic attention -> single HBM store.
        o_ref[...] = _semantic_attention(feats, mW1[...], mb1[...], mw2[...])

    return kernel


# ---------------- Attribute_agg forward --------------------------------------
def attribute_agg(attr_feat, ADJ, gcn_W, gcn_b, dif_W, dif_b, attr_att, mul_att):
    M = len(attr_feat)
    assert M >= 2, "Attribute_agg needs at least two attribute views"
    N, D = attr_feat[0].shape
    # PyTorch: ADJ_pop = deepcopy(ADJ); ADJ_pop.pop(i); use ADJ_pop[0]
    dif_idx = tuple(1 if i == 0 else 0 for i in range(M))

    attr_W1, attr_b1, attr_w2 = attr_att
    mul_W1, mul_b1, mul_w2 = mul_att

    args = (
        list(attr_feat)
        + list(ADJ)
        + list(gcn_W)
        + [b.reshape(1, D) for b in gcn_b]
        + list(dif_W)
        + [b.reshape(1, D) for b in dif_b]
        + [attr_W1, attr_b1.reshape(1, D), attr_w2.reshape(1, D),
           mul_W1, mul_b1.reshape(1, D), mul_w2.reshape(1, D)]
    )

    flops = (
        M * (2 * N * D * (2 * D)            # merged x @ [W_gcn | W_dif]
             + 2 * (2 * N * N * D)          # two adjacency matmuls
             + 2 * (2 * N) * D * D)         # batched 2-view attention matmul
        + 2 * (M * N) * D * D               # final attention matmul
    )
    transcendentals = M * (2 * N * D) + M * N * D + 4 * M
    bytes_accessed = 4 * (
        M * (N * D + N * N + 2 * D * D + 2 * D)
        + 2 * (D * D + 2 * D)
        + N * D)

    return pl.pallas_call(
        _make_fused_kernel(M, D, dif_idx),
        out_shape=jax.ShapeDtypeStruct((N, D), jnp.float32),
        in_specs=[_VMEM] * len(args),
        out_specs=_VMEM,
        cost_estimate=pl.CostEstimate(
            flops=flops,
            transcendentals=transcendentals,
            bytes_accessed=bytes_accessed),
    )(*args)


# ---------------- pure-JAX reference (for correctness check) -----------------
def _reference(attr_feat, ADJ, gcn_W, gcn_b, dif_W, dif_b, attr_att, mul_att):
    def gcn(x, adj, W, b):
        return adj @ (x @ W) + b

    def att(feats, W1, b1, w2):
        z = jnp.stack(feats, axis=0)                          # (M, N, D)
        h = jnp.tanh(jnp.einsum("mnd,de->mne", z, W1) + b1)
        s = jnp.einsum("mnd,d->mn", h, w2)
        beta = jax.nn.softmax(jnp.mean(s, axis=1))            # (M,)
        return jnp.einsum("m,mnd->nd", beta, z)

    M = len(attr_feat)
    feats = []
    for i in range(M):
        intra = gcn(attr_feat[i], ADJ[i], gcn_W[i], gcn_b[i])
        rest = [ADJ[j] for j in range(M) if j != i]
        dif = gcn(attr_feat[i], rest[0], dif_W[i], dif_b[i])
        feats.append(att([intra, dif], *attr_att))
    return att(feats, *mul_att)


if __name__ == "__main__":
    N, D, nei_num = 16, 32, 2
    key = jax.random.PRNGKey(0)
    keys = jax.random.split(key, 20)
    stdv = 1.0 / math.sqrt(D)

    def unif(k, shape):
        return jax.random.uniform(k, shape, jnp.float32, -stdv, stdv)

    # inputs: per-attribute node features and (row-normalized) adjacency
    attr_feat = [jax.random.normal(keys[i], (N, D), jnp.float32)
                 for i in range(nei_num)]
    ADJ = []
    for i in range(nei_num):
        a = (jax.random.uniform(keys[2 + i], (N, N)) > 0.5).astype(jnp.float32)
        a = a + jnp.eye(N, dtype=jnp.float32)
        a = a / jnp.sum(a, axis=1, keepdims=True)
        ADJ.append(a)

    # deterministic parameter init (matches GCN.reset_parameters uniform(-stdv, stdv))
    gcn_W = [unif(keys[4 + i], (D, D)) for i in range(nei_num)]
    gcn_b = [unif(keys[6 + i], (D,)) for i in range(nei_num)]
    dif_W = [unif(keys[8 + i], (D, D)) for i in range(nei_num)]
    dif_b = [unif(keys[10 + i], (D,)) for i in range(nei_num)]
    attr_att = (unif(keys[12], (D, D)), unif(keys[13], (D,)), unif(keys[14], (D,)))
    mul_att = (unif(keys[15], (D, D)), unif(keys[16], (D,)), unif(keys[17], (D,)))

    out = attribute_agg(attr_feat, ADJ, gcn_W, gcn_b, dif_W, dif_b,
                        attr_att, mul_att)
    out = jax.block_until_ready(out)
    assert out.shape == (N, D) and out.dtype == jnp.float32

    ref = jax.block_until_ready(
        _reference(attr_feat, ADJ, gcn_W, gcn_b, dif_W, dif_b,
                   attr_att, mul_att))
    np.testing.assert_allclose(np.asarray(out), np.asarray(ref),
                               rtol=2e-3, atol=2e-3)
    print("KERNEL_OK")
</pallas_src>

<mosaic_0001>
module attributes {stable_mosaic.version = 11 : i64} {
  func.func @kernel(%arg0: memref<16x32xf32, #tpu.memory_space<vmem>>, %arg1: memref<16x32xf32, #tpu.memory_space<vmem>>, %arg2: memref<16x16xf32, #tpu.memory_space<vmem>>, %arg3: memref<16x16xf32, #tpu.memory_space<vmem>>, %arg4: memref<32x32xf32, #tpu.memory_space<vmem>>, %arg5: memref<32x32xf32, #tpu.memory_space<vmem>>, %arg6: memref<1x32xf32, #tpu.memory_space<vmem>>, %arg7: memref<1x32xf32, #tpu.memory_space<vmem>>, %arg8: memref<32x32xf32, #tpu.memory_space<vmem>>, %arg9: memref<32x32xf32, #tpu.memory_space<vmem>>, %arg10: memref<1x32xf32, #tpu.memory_space<vmem>>, %arg11: memref<1x32xf32, #tpu.memory_space<vmem>>, %arg12: memref<32x32xf32, #tpu.memory_space<vmem>>, %arg13: memref<1x32xf32, #tpu.memory_space<vmem>>, %arg14: memref<1x32xf32, #tpu.memory_space<vmem>>, %arg15: memref<32x32xf32, #tpu.memory_space<vmem>>, %arg16: memref<1x32xf32, #tpu.memory_space<vmem>>, %arg17: memref<1x32xf32, #tpu.memory_space<vmem>>, %arg18: memref<16x32xf32, #tpu.memory_space<vmem>>) attributes {dimension_semantics = [], scalar_prefetch = 0 : i64, scratch_operands = 0 : i64, tpu.core_type = #tpu.core_type<tc>} {
    %c0 = arith.constant 0 : index
    %c0_0 = arith.constant 0 : index
    %0 = vector.load %arg0[%c0, %c0_0] : memref<16x32xf32, #tpu.memory_space<vmem>>, vector<16x32xf32>
    %c0_1 = arith.constant 0 : index
    %c0_2 = arith.constant 0 : index
    %1 = vector.load %arg4[%c0_1, %c0_2] : memref<32x32xf32, #tpu.memory_space<vmem>>, vector<32x32xf32>
    %c0_3 = arith.constant 0 : index
    %c0_4 = arith.constant 0 : index
    %2 = vector.load %arg8[%c0_3, %c0_4] : memref<32x32xf32, #tpu.memory_space<vmem>>, vector<32x32xf32>
    %3 = tpu.concatenate %1, %2 in 1 : vector<32x32xf32>, vector<32x32xf32> -> vector<32x64xf32>
    %cst = arith.constant dense<0.000000e+00> : vector<16x64xf32>
    %4 = tpu.matmul %0, %3, %cst {dimension_numbers = #tpu.dot_dimension_numbers<[1], [0], [0], [1], [0, 0, 1, 1], [], []>} : vector<16x32xf32>, vector<32x64xf32>, vector<16x64xf32> -> vector<16x64xf32>
    %c0_5 = arith.constant 0 : index
    %c0_6 = arith.constant 0 : index
    %5 = vector.load %arg2[%c0_5, %c0_6] : memref<16x16xf32, #tpu.memory_space<vmem>>, vector<16x16xf32>
    %6 = vector.extract_strided_slice %4 {offsets = [0, 0], sizes = [16, 32], strides = [1, 1]} : vector<16x64xf32> to vector<16x32xf32>
    %cst_7 = arith.constant dense<0.000000e+00> : vector<16x32xf32>
    %7 = tpu.matmul %5, %6, %cst_7 {dimension_numbers = #tpu.dot_dimension_numbers<[1], [0], [0], [1], [0, 0, 1, 1], [], []>} : vector<16x16xf32>, vector<16x32xf32>, vector<16x32xf32> -> vector<16x32xf32>
    %c0_8 = arith.constant 0 : index
    %c0_9 = arith.constant 0 : index
    %8 = vector.load %arg6[%c0_8, %c0_9] : memref<1x32xf32, #tpu.memory_space<vmem>>, vector<1x32xf32>
    %9 = vector.broadcast %8 : vector<1x32xf32> to vector<16x32xf32>
    %10 = arith.addf %7, %9 : vector<16x32xf32>
    %c0_10 = arith.constant 0 : index
    %c0_11 = arith.constant 0 : index
    %11 = vector.load %arg3[%c0_10, %c0_11] : memref<16x16xf32, #tpu.memory_space<vmem>>, vector<16x16xf32>
    %12 = vector.extract_strided_slice %4 {offsets = [0, 32], sizes = [16, 32], strides = [1, 1]} : vector<16x64xf32> to vector<16x32xf32>
    %cst_12 = arith.constant dense<0.000000e+00> : vector<16x32xf32>
    %13 = tpu.matmul %11, %12, %cst_12 {dimension_numbers = #tpu.dot_dimension_numbers<[1], [0], [0], [1], [0, 0, 1, 1], [], []>} : vector<16x16xf32>, vector<16x32xf32>, vector<16x32xf32> -> vector<16x32xf32>
    %c0_13 = arith.constant 0 : index
    %c0_14 = arith.constant 0 : index
    %14 = vector.load %arg10[%c0_13, %c0_14] : memref<1x32xf32, #tpu.memory_space<vmem>>, vector<1x32xf32>
    %15 = vector.broadcast %14 : vector<1x32xf32> to vector<16x32xf32>
    %16 = arith.addf %13, %15 : vector<16x32xf32>
    %c0_15 = arith.constant 0 : index
    %c0_16 = arith.constant 0 : index
    %17 = vector.load %arg12[%c0_15, %c0_16] : memref<32x32xf32, #tpu.memory_space<vmem>>, vector<32x32xf32>
    %c0_17 = arith.constant 0 : index
    %c0_18 = arith.constant 0 : index
    %18 = vector.load %arg13[%c0_17, %c0_18] : memref<1x32xf32, #tpu.memory_space<vmem>>, vector<1x32xf32>
    %c0_19 = arith.constant 0 : index
    %c0_20 = arith.constant 0 : index
    %19 = vector.load %arg14[%c0_19, %c0_20] : memref<1x32xf32, #tpu.memory_space<vmem>>, vector<1x32xf32>
    %20 = tpu.concatenate %10, %16 in 0 : vector<16x32xf32>, vector<16x32xf32> -> vector<32x32xf32>
    %cst_21 = arith.constant dense<0.000000e+00> : vector<32x32xf32>
    %21 = tpu.matmul %20, %17, %cst_21 {dimension_numbers = #tpu.dot_dimension_numbers<[1], [0], [0], [1], [0, 0, 1, 1], [], []>} : vector<32x32xf32>, vector<32x32xf32>, vector<32x32xf32> -> vector<32x32xf32>
    %22 = vector.broadcast %18 : vector<1x32xf32> to vector<32x32xf32>
    %23 = arith.addf %21, %22 : vector<32x32xf32>
    %24 = math.tanh %23 : vector<32x32xf32>
    %25 = vector.extract_strided_slice %24 {offsets = [0, 0], sizes = [16, 32], strides = [1, 1]} : vector<32x32xf32> to vector<16x32xf32>
    %cst_22 = arith.constant dense<0.000000e+00> : vector<32xf32>
    %26 = vector.multi_reduction <add>, %25, %cst_22 [0] : vector<16x32xf32> to vector<32xf32>
    %27 = vector.shape_cast %26 : vector<32xf32> to vector<1x32xf32>
    %cst_23 = arith.constant 1.600000e+01 : f32
    %28 = vector.broadcast %cst_23 : f32 to vector<1x32xf32>
    %29 = arith.divf %27, %28 : vector<1x32xf32>
    %30 = arith.mulf %29, %19 : vector<1x32xf32>
    %cst_24 = arith.constant dense<0.000000e+00> : vector<1xf32>
    %31 = vector.multi_reduction <add>, %30, %cst_24 [1] : vector<1x32xf32> to vector<1xf32>
    %32 = vector.shape_cast %31 : vector<1xf32> to vector<1x1xf32>
    %33 = vector.extract_strided_slice %24 {offsets = [16, 0], sizes = [16, 32], strides = [1, 1]} : vector<32x32xf32> to vector<16x32xf32>
    %cst_25 = arith.constant dense<0.000000e+00> : vector<32xf32>
    %34 = vector.multi_reduction <add>, %33, %cst_25 [0] : vector<16x32xf32> to vector<32xf32>
    %35 = vector.shape_cast %34 : vector<32xf32> to vector<1x32xf32>
    %cst_26 = arith.constant 1.600000e+01 : f32
    %36 = vector.broadcast %cst_26 : f32 to vector<1x32xf32>
    %37 = arith.divf %35, %36 : vector<1x32xf32>
    %38 = arith.mulf %37, %19 : vector<1x32xf32>
    %cst_27 = arith.constant dense<0.000000e+00> : vector<1xf32>
    %39 = vector.multi_reduction <add>, %38, %cst_27 [1] : vector<1x32xf32> to vector<1xf32>
    %40 = vector.shape_cast %39 : vector<1xf32> to vector<1x1xf32>
    %41 = arith.maximumf %32, %40 : vector<1x1xf32>
    %42 = arith.subf %32, %41 : vector<1x1xf32>
    %43 = math.exp %42 : vector<1x1xf32>
    %44 = arith.subf %40, %41 : vector<1x1xf32>
    %45 = math.exp %44 : vector<1x1xf32>
    %46 = arith.addf %43, %45 : vector<1x1xf32>
    %47 = arith.divf %43, %46 : vector<1x1xf32>
    %48 = arith.divf %45, %46 : vector<1x1xf32>
    %49 = vector.broadcast %47 : vector<1x1xf32> to vector<16x32xf32>
    %50 = arith.mulf %49, %10 : vector<16x32xf32>
    %51 = vector.broadcast %48 : vector<1x1xf32> to vector<16x32xf32>
    %52 = arith.mulf %51, %16 : vector<16x32xf32>
    %53 = arith.addf %50, %52 : vector<16x32xf32>
    %c0_28 = arith.constant 0 : index
    %c0_29 = arith.constant 0 : index
    %54 = vector.load %arg1[%c0_28, %c0_29] : memref<16x32xf32, #tpu.memory_space<vmem>>, vector<16x32xf32>
    %c0_30 = arith.constant 0 : index
    %c0_31 = arith.constant 0 : index
    %55 = vector.load %arg5[%c0_30, %c0_31] : memref<32x32xf32, #tpu.memory_space<vmem>>, vector<32x32xf32>
    %c0_32 = arith.constant 0 : index
    %c0_33 = arith.constant 0 : index
    %56 = vector.load %arg9[%c0_32, %c0_33] : memref<32x32xf32, #tpu.memory_space<vmem>>, vector<32x32xf32>
    %57 = tpu.concatenate %55, %56 in 1 : vector<32x32xf32>, vector<32x32xf32> -> vector<32x64xf32>
    %cst_34 = arith.constant dense<0.000000e+00> : vector<16x64xf32>
    %58 = tpu.matmul %54, %57, %cst_34 {dimension_numbers = #tpu.dot_dimension_numbers<[1], [0], [0], [1], [0, 0, 1, 1], [], []>} : vector<16x32xf32>, vector<32x64xf32>, vector<16x64xf32> -> vector<16x64xf32>
    %c0_35 = arith.constant 0 : index
    %c0_36 = arith.constant 0 : index
    %59 = vector.load %arg3[%c0_35, %c0_36] : memref<16x16xf32, #tpu.memory_space<vmem>>, vector<16x16xf32>
    %60 = vector.extract_strided_slice %58 {offsets = [0, 0], sizes = [16, 32], strides = [1, 1]} : vector<16x64xf32> to vector<16x32xf32>
    %cst_37 = arith.constant dense<0.000000e+00> : vector<16x32xf32>
    %61 = tpu.matmul %59, %60, %cst_37 {dimension_numbers = #tpu.dot_dimension_numbers<[1], [0], [0], [1], [0, 0, 1, 1], [], []>} : vector<16x16xf32>, vector<16x32xf32>, vector<16x32xf32> -> vector<16x32xf32>
    %c0_38 = arith.constant 0 : index
    %c0_39 = arith.constant 0 : index
    %62 = vector.load %arg7[%c0_38, %c0_39] : memref<1x32xf32, #tpu.memory_space<vmem>>, vector<1x32xf32>
    %63 = vector.broadcast %62 : vector<1x32xf32> to vector<16x32xf32>
    %64 = arith.addf %61, %63 : vector<16x32xf32>
    %c0_40 = arith.constant 0 : index
    %c0_41 = arith.constant 0 : index
    %65 = vector.load %arg2[%c0_40, %c0_41] : memref<16x16xf32, #tpu.memory_space<vmem>>, vector<16x16xf32>
    %66 = vector.extract_strided_slice %58 {offsets = [0, 32], sizes = [16, 32], strides = [1, 1]} : vector<16x64xf32> to vector<16x32xf32>
    %cst_42 = arith.constant dense<0.000000e+00> : vector<16x32xf32>
    %67 = tpu.matmul %65, %66, %cst_42 {dimension_numbers = #tpu.dot_dimension_numbers<[1], [0], [0], [1], [0, 0, 1, 1], [], []>} : vector<16x16xf32>, vector<16x32xf32>, vector<16x32xf32> -> vector<16x32xf32>
    %c0_43 = arith.constant 0 : index
    %c0_44 = arith.constant 0 : index
    %68 = vector.load %arg11[%c0_43, %c0_44] : memref<1x32xf32, #tpu.memory_space<vmem>>, vector<1x32xf32>
    %69 = vector.broadcast %68 : vector<1x32xf32> to vector<16x32xf32>
    %70 = arith.addf %67, %69 : vector<16x32xf32>
    %c0_45 = arith.constant 0 : index
    %c0_46 = arith.constant 0 : index
    %71 = vector.load %arg12[%c0_45, %c0_46] : memref<32x32xf32, #tpu.memory_space<vmem>>, vector<32x32xf32>
    %c0_47 = arith.constant 0 : index
    %c0_48 = arith.constant 0 : index
    %72 = vector.load %arg13[%c0_47, %c0_48] : memref<1x32xf32, #tpu.memory_space<vmem>>, vector<1x32xf32>
    %c0_49 = arith.constant 0 : index
    %c0_50 = arith.constant 0 : index
    %73 = vector.load %arg14[%c0_49, %c0_50] : memref<1x32xf32, #tpu.memory_space<vmem>>, vector<1x32xf32>
    %74 = tpu.concatenate %64, %70 in 0 : vector<16x32xf32>, vector<16x32xf32> -> vector<32x32xf32>
    %cst_51 = arith.constant dense<0.000000e+00> : vector<32x32xf32>
    %75 = tpu.matmul %74, %71, %cst_51 {dimension_numbers = #tpu.dot_dimension_numbers<[1], [0], [0], [1], [0, 0, 1, 1], [], []>} : vector<32x32xf32>, vector<32x32xf32>, vector<32x32xf32> -> vector<32x32xf32>
    %76 = vector.broadcast %72 : vector<1x32xf32> to vector<32x32xf32>
    %77 = arith.addf %75, %76 : vector<32x32xf32>
    %78 = math.tanh %77 : vector<32x32xf32>
    %79 = vector.extract_strided_slice %78 {offsets = [0, 0], sizes = [16, 32], strides = [1, 1]} : vector<32x32xf32> to vector<16x32xf32>
    %cst_52 = arith.constant dense<0.000000e+00> : vector<32xf32>
    %80 = vector.multi_reduction <add>, %79, %cst_52 [0] : vector<16x32xf32> to vector<32xf32>
    %81 = vector.shape_cast %80 : vector<32xf32> to vector<1x32xf32>
    %cst_53 = arith.constant 1.600000e+01 : f32
    %82 = vector.broadcast %cst_53 : f32 to vector<1x32xf32>
    %83 = arith.divf %81, %82 : vector<1x32xf32>
    %84 = arith.mulf %83, %73 : vector<1x32xf32>
    %cst_54 = arith.constant dense<0.000000e+00> : vector<1xf32>
    %85 = vector.multi_reduction <add>, %84, %cst_54 [1] : vector<1x32xf32> to vector<1xf32>
    %86 = vector.shape_cast %85 : vector<1xf32> to vector<1x1xf32>
    %87 = vector.extract_strided_slice %78 {offsets = [16, 0], sizes = [16, 32], strides = [1, 1]} : vector<32x32xf32> to vector<16x32xf32>
    %cst_55 = arith.constant dense<0.000000e+00> : vector<32xf32>
    %88 = vector.multi_reduction <add>, %87, %cst_55 [0] : vector<16x32xf32> to vector<32xf32>
    %89 = vector.shape_cast %88 : vector<32xf32> to vector<1x32xf32>
    %cst_56 = arith.constant 1.600000e+01 : f32
    %90 = vector.broadcast %cst_56 : f32 to vector<1x32xf32>
    %91 = arith.divf %89, %90 : vector<1x32xf32>
    %92 = arith.mulf %91, %73 : vector<1x32xf32>
    %cst_57 = arith.constant dense<0.000000e+00> : vector<1xf32>
    %93 = vector.multi_reduction <add>, %92, %cst_57 [1] : vector<1x32xf32> to vector<1xf32>
    %94 = vector.shape_cast %93 : vector<1xf32> to vector<1x1xf32>
    %95 = arith.maximumf %86, %94 : vector<1x1xf32>
    %96 = arith.subf %86, %95 : vector<1x1xf32>
    %97 = math.exp %96 : vector<1x1xf32>
    %98 = arith.subf %94, %95 : vector<1x1xf32>
    %99 = math.exp %98 : vector<1x1xf32>
    %100 = arith.addf %97, %99 : vector<1x1xf32>
    %101 = arith.divf %97, %100 : vector<1x1xf32>
    %102 = arith.divf %99, %100 : vector<1x1xf32>
    %103 = vector.broadcast %101 : vector<1x1xf32> to vector<16x32xf32>
    %104 = arith.mulf %103, %64 : vector<16x32xf32>
    %105 = vector.broadcast %102 : vector<1x1xf32> to vector<16x32xf32>
    %106 = arith.mulf %105, %70 : vector<16x32xf32>
    %107 = arith.addf %104, %106 : vector<16x32xf32>
    %c0_58 = arith.constant 0 : index
    %c0_59 = arith.constant 0 : index
    %108 = vector.load %arg15[%c0_58, %c0_59] : memref<32x32xf32, #tpu.memory_space<vmem>>, vector<32x32xf32>
    %c0_60 = arith.constant 0 : index
    %c0_61 = arith.constant 0 : index
    %109 = vector.load %arg16[%c0_60, %c0_61] : memref<1x32xf32, #tpu.memory_space<vmem>>, vector<1x32xf32>
    %c0_62 = arith.constant 0 : index
    %c0_63 = arith.constant 0 : index
    %110 = vector.load %arg17[%c0_62, %c0_63] : memref<1x32xf32, #tpu.memory_space<vmem>>, vector<1x32xf32>
    %111 = tpu.concatenate %53, %107 in 0 : vector<16x32xf32>, vector<16x32xf32> -> vector<32x32xf32>
    %cst_64 = arith.constant dense<0.000000e+00> : vector<32x32xf32>
    %112 = tpu.matmul %111, %108, %cst_64 {dimension_numbers = #tpu.dot_dimension_numbers<[1], [0], [0], [1], [0, 0, 1, 1], [], []>} : vector<32x32xf32>, vector<32x32xf32>, vector<32x32xf32> -> vector<32x32xf32>
    %113 = vector.broadcast %109 : vector<1x32xf32> to vector<32x32xf32>
    %114 = arith.addf %112, %113 : vector<32x32xf32>
    %115 = math.tanh %114 : vector<32x32xf32>
    %116 = vector.extract_strided_slice %115 {offsets = [0, 0], sizes = [16, 32], strides = [1, 1]} : vector<32x32xf32> to vector<16x32xf32>
    %cst_65 = arith.constant dense<0.000000e+00> : vector<32xf32>
    %117 = vector.multi_reduction <add>, %116, %cst_65 [0] : vector<16x32xf32> to vector<32xf32>
    %118 = vector.shape_cast %117 : vector<32xf32> to vector<1x32xf32>
    %cst_66 = arith.constant 1.600000e+01 : f32
    %119 = vector.broadcast %cst_66 : f32 to vector<1x32xf32>
    %120 = arith.divf %118, %119 : vector<1x32xf32>
    %121 = arith.mulf %120, %110 : vector<1x32xf32>
    %cst_67 = arith.constant dense<0.000000e+00> : vector<1xf32>
    %122 = vector.multi_reduction <add>, %121, %cst_67 [1] : vector<1x32xf32> to vector<1xf32>
    %123 = vector.shape_cast %122 : vector<1xf32> to vector<1x1xf32>
    %124 = vector.extract_strided_slice %115 {offsets = [16, 0], sizes = [16, 32], strides = [1, 1]} : vector<32x32xf32> to vector<16x32xf32>
    %cst_68 = arith.constant dense<0.000000e+00> : vector<32xf32>
    %125 = vector.multi_reduction <add>, %124, %cst_68 [0] : vector<16x32xf32> to vector<32xf32>
    %126 = vector.shape_cast %125 : vector<32xf32> to vector<1x32xf32>
    %cst_69 = arith.constant 1.600000e+01 : f32
    %127 = vector.broadcast %cst_69 : f32 to vector<1x32xf32>
    %128 = arith.divf %126, %127 : vector<1x32xf32>
    %129 = arith.mulf %128, %110 : vector<1x32xf32>
    %cst_70 = arith.constant dense<0.000000e+00> : vector<1xf32>
    %130 = vector.multi_reduction <add>, %129, %cst_70 [1] : vector<1x32xf32> to vector<1xf32>
    %131 = vector.shape_cast %130 : vector<1xf32> to vector<1x1xf32>
    %132 = arith.maximumf %123, %131 : vector<1x1xf32>
    %133 = arith.subf %123, %132 : vector<1x1xf32>
    %134 = math.exp %133 : vector<1x1xf32>
    %135 = arith.subf %131, %132 : vector<1x1xf32>
    %136 = math.exp %135 : vector<1x1xf32>
    %137 = arith.addf %134, %136 : vector<1x1xf32>
    %138 = arith.divf %134, %137 : vector<1x1xf32>
    %139 = arith.divf %136, %137 : vector<1x1xf32>
    %140 = vector.broadcast %138 : vector<1x1xf32> to vector<16x32xf32>
    %141 = arith.mulf %140, %53 : vector<16x32xf32>
    %142 = vector.broadcast %139 : vector<1x1xf32> to vector<16x32xf32>
    %143 = arith.mulf %142, %107 : vector<16x32xf32>
    %144 = arith.addf %141, %143 : vector<16x32xf32>
    %c0_71 = arith.constant 0 : index
    %c0_72 = arith.constant 0 : index
    %145 = vector.load %arg18[%c0_71, %c0_72] : memref<16x32xf32, #tpu.memory_space<vmem>>, vector<16x32xf32>
    tpu.vector_store %arg18[%c0_71, %c0_72], %144 {strides = array<i32>} : memref<16x32xf32, #tpu.memory_space<vmem>>, vector<16x32xf32>,
    return
  }
}

</mosaic_0001>

<bundles_post_ra>
// kernel: tpu_custom_call.1
= control target key start
LH: loop header
LB: loop body
LE: loop exit
PB: predicated region body
PF: predicated region fallthrough
CT: control target
= control target key end

     0   :  { %s2284_s0 = inlined_call_operand.hbm [shape: f32[16,32], index: 0, kind: input, shape index: {}]   ;;  %s2285_s1 = inlined_call_operand.hbm [shape: f32[16,32], index: 1, kind: input, shape index: {}]   ;;  %s2286_s2 = inlined_call_operand.hbm [shape: f32[16,16], index: 2, kind: input, shape index: {}]   ;;  %s2287_s3 = inlined_call_operand.hbm [shape: f32[16,16], index: 3, kind: input, shape index: {}]   ;;  %s2288_s4 = inlined_call_operand.hbm [shape: f32[32,32], index: 4, kind: input, shape index: {}]   ;;  %s2289_s5 = inlined_call_operand.hbm [shape: f32[32,32], index: 5, kind: input, shape index: {}]   ;;  %s2290_s6 = inlined_call_operand.vmem [shape: f32[1,32], index: 6, kind: input, shape index: {}]   ;;  %s2291_s7 = inlined_call_operand.vmem [shape: f32[1,32], index: 7, kind: input, shape index: {}]   ;;  %s2292_s8 = inlined_call_operand.hbm [shape: f32[32,32], index: 8, kind: input, shape index: {}]   ;;  %s2293_s9 = inlined_call_operand.vmem [shape: f32[32,32], index: 9, kind: input, shape index: {}]   ;;  %s2294_s10 = inlined_call_operand.vmem [shape: f32[1,32], index: 10, kind: input, shape index: {}]   ;;  %s2295_s11 = inlined_call_operand.vmem [shape: f32[1,32], index: 11, kind: input, shape index: {}]   ;;  %s2296_s12 = inlined_call_operand.hbm [shape: f32[32,32], index: 12, kind: input, shape index: {}]   ;;  %s2297_s13 = inlined_call_operand.vmem [shape: f32[1,32], index: 13, kind: input, shape index: {}]   ;;  %s2298_s14 = inlined_call_operand.vmem [shape: f32[1,32], index: 14, kind: input, shape index: {}]   ;;  %s2299_s15 = inlined_call_operand.hbm [shape: f32[32,32], index: 15, kind: input, shape index: {}]   ;;  %s2300_s16 = inlined_call_operand.vmem [shape: f32[1,32], index: 16, kind: input, shape index: {}]   ;;  %s2301_s17 = inlined_call_operand.vmem [shape: f32[1,32], index: 17, kind: input, shape index: {}]   ;;  %s2302_s18 = inlined_call_operand.hbm [shape: f32[16,32], index: 18, kind: output, shape index: {}]  }
   0x1   :  { %2307 = sst [smem:[#allocation24_spill]] %s2284_s0 }
   0x2   :  { %2308 = sst [smem:[#allocation25_spill]] %s2285_s1 }
   0x3   :  { %2309 = sst [smem:[#allocation26_spill]] %s2286_s2 }
   0x4   :  { %2310 = sst [smem:[#allocation27_spill]] %s2302_s18 }
   0x5   :  { %23 = vsyncpa [#allocation3], 0 }
   0x6   :  { %24 = vsyncpa [#allocation6], 0 }
   0x7   :  { %25 = vsyncpa [#allocation9], 0 }
   0x8   :  { %26 = vsyncpa [#allocation12], 0 }
   0x9   :  { %27 = vsyncpa [#allocation15], 0 }
   0xa   :  { %28 = vsyncpa [#allocation4], 0  ;;  %s1825_s27 = smov [#allocation5]   ;;  %s1826_s29 = smov [#allocation8]  }
   0xb   :  { %s46_s28 = sshll.u32 %s1825_s27, 4  ;;  %s70_s30 = sshll.u32 %s1826_s29, 4  ;;  %s47_s28 = int_to_ptr.vmem [resolvable:$true] %s46_s28  ;;  %s1934_s30 = int_to_ptr.vmem [resolvable:$true] %s70_s30 }
   0xc   :  { %s2311_s1 = sld [smem:[#allocation25_spill]] }
  0x12   :  { %s1593_s20 = scalar_lea.hbm %s2311_s1, 256 }
  0x13   :  { %p1594_p0 = scmp.ne.s32.totalorder %s2311_s1, %s1593_s20  ;;  %p1597_p1 = scmp.lt.u32.totalorder %s1593_s20, %s2311_s1 }
  0x15   :  { %p1599_p2 = pnand %p1597_p1, %p1594_p0 }
  0x17   :  { %1602 = shalt.err (!%p1599_p2)
}
  0x18   :  { %s1603_s24 = scalar_lea.vmem %s47_s28, 256  ;;  %p1608_p4 = scmp.lt.s32.totalorder %s47_s28, %s47_s28 }
  0x19   :  { %p1604_p3 = scmp.ne.s32.totalorder %s47_s28, %s1603_s24  ;;  %p1609_p5 = scmp.lt.s32.totalorder %s1603_s24, %s1603_s24 }
  0x1b   :  { %p1610_p6 = por %p1609_p5, %p1608_p4 }
  0x1d   :  { %p1611_p7 = pnand %p1610_p6, %p1604_p3 }
  0x1f   :  { %1614 = shalt.err (!%p1611_p7)
}
  0x20   :  { %s1827_s25 = smov 128   ;;  %s1828_s26 = smov 8  }
  0x21   :  { %52 = dma.hbm_to_vmem [thread:$0]  %s2311_s1, 256, %s47_s28, [#allocation6], %s1827_s25, %s1827_s25, %s1828_s26  }
  0x22   :  { %s1615_s20 = scalar_lea.hbm %s2287_s3, 256 }
  0x23   :  { %p1616_p8 = scmp.ne.s32.totalorder %s2287_s3, %s1615_s20  ;;  %p1619_p9 = scmp.lt.u32.totalorder %s1615_s20, %s2287_s3 }
  0x25   :  { %p1621_p10 = pnand %p1619_p9, %p1616_p8 }
  0x27   :  { %1624 = shalt.err (!%p1621_p10)
}
  0x28   :  { %s1625_s24 = scalar_lea.vmem %s1934_s30, 256  ;;  %p1630_p12 = scmp.lt.s32.totalorder %s1934_s30, %s1934_s30 }
  0x29   :  { %p1626_p11 = scmp.ne.s32.totalorder %s1934_s30, %s1625_s24  ;;  %p1631_p13 = scmp.lt.s32.totalorder %s1625_s24, %s1625_s24 }
  0x2b   :  { %p1632_p0 = por %p1631_p13, %p1630_p12 }
  0x2d   :  { %p1633_p1 = pnand %p1632_p0, %p1626_p11 }
  0x2f   :  { %1636 = shalt.err (!%p1633_p1)
}
  0x30   :  { %76 = dma.hbm_to_vmem [thread:$0]  %s2287_s3, 256, %s1934_s30, [#allocation9], %s1827_s25, %s1827_s25, %s1828_s26  }
  0x31   :  { %s1829_s27 = smov [#allocation11]   ;;  %s1830_s0 = smov [#allocation14]  }
  0x32   :  { %s94_s29 = sshll.u32 %s1829_s27, 4  ;;  %s128_s19 = sshll.u32 %s1830_s0, 4  ;;  %s95_s29 = int_to_ptr.vmem [resolvable:$true] %s94_s29  ;;  %s1971_s19 = int_to_ptr.vmem [resolvable:$true] %s128_s19 }
  0x33   :  { %s1637_s22 = scalar_lea.hbm %s2289_s5, 512 }
  0x34   :  { %p1638_p2 = scmp.ne.s32.totalorder %s2289_s5, %s1637_s22  ;;  %p1641_p3 = scmp.lt.u32.totalorder %s1637_s22, %s2289_s5 }
  0x36   :  { %p1643_p4 = pnand %p1641_p3, %p1638_p2 }
  0x38   :  { %1646 = shalt.err (!%p1643_p4)
}
  0x39   :  { %s1647_s3 = scalar_lea.vmem %s95_s29, 512  ;;  %p1652_p6 = scmp.lt.s32.totalorder %s95_s29, %s95_s29 }
  0x3a   :  { %p1648_p5 = scmp.ne.s32.totalorder %s95_s29, %s1647_s3  ;;  %p1653_p7 = scmp.lt.s32.totalorder %s1647_s3, %s1647_s3 }
  0x3c   :  { %p1654_p8 = por %p1653_p7, %p1652_p6 }
  0x3e   :  { %p1655_p9 = pnand %p1654_p8, %p1648_p5 }
  0x40   :  { %1658 = shalt.err (!%p1655_p9)
}
  0x41   :  { %100 = dma.hbm_to_vmem [thread:$0]  %s2289_s5, 512, %s95_s29, [#allocation12], %s1827_s25, %s1827_s25, %s1828_s26  }
  0x42   :  { %s1659_s18 = scalar_lea.hbm %s2296_s12, 512 }
  0x43   :  { %p1660_p10 = scmp.ne.s32.totalorder %s2296_s12, %s1659_s18  ;;  %p1663_p11 = scmp.lt.u32.totalorder %s1659_s18, %s2296_s12 }
  0x45   :  { %p1665_p12 = pnand %p1663_p11, %p1660_p10 }
  0x47   :  { %1668 = shalt.err (!%p1665_p12)
}
  0x48   :  { %s1669_s2 = scalar_lea.vmem %s1971_s19, 512  ;;  %p1674_p0 = scmp.lt.s32.totalorder %s1971_s19, %s1971_s19 }
  0x49   :  { %p1670_p13 = scmp.ne.s32.totalorder %s1971_s19, %s1669_s2  ;;  %p1675_p1 = scmp.lt.s32.totalorder %s1669_s2, %s1669_s2 }
  0x4b   :  { %p1676_p2 = por %p1675_p1, %p1674_p0 }
  0x4d   :  { %p1677_p3 = pnand %p1676_p2, %p1670_p13 }
  0x4f   :  { %1680 = shalt.err (!%p1677_p3)
}
  0x50   :  { %134 = dma.hbm_to_vmem [thread:$0]  %s2296_s12, 512, %s1971_s19, [#allocation15], %s1827_s25, %s1827_s25, %s1828_s26  }
  0x51   :  { %s1831_s23 = smov [#allocation2]   ;;  %s1832_s3 = smov [#allocation7]  }
  0x52   :  { %s34_s24 = sshll.u32 %s1831_s23, 4  ;;  %s58_s30 = sshll.u32 %s1832_s3, 4  ;;  %s35_s24 = int_to_ptr.vmem [resolvable:$true] %s34_s24  ;;  %s2008_s30 = int_to_ptr.vmem [resolvable:$true] %s58_s30 }
  0x53   :  { %s2312_s27 = sld [smem:[#allocation24_spill]] }
  0x59   :  { %s1681_s18 = scalar_lea.hbm %s2312_s27, 256 }
  0x5a   :  { %p1682_p4 = scmp.ne.s32.totalorder %s2312_s27, %s1681_s18  ;;  %p1685_p5 = scmp.lt.u32.totalorder %s1681_s18, %s2312_s27 }
  0x5c   :  { %p1687_p6 = pnand %p1685_p5, %p1682_p4 }
  0x5e   :  { %1690 = shalt.err (!%p1687_p6)
}
  0x5f   :  { %s1691_s12 = scalar_lea.vmem %s35_s24, 256  ;;  %p1696_p8 = scmp.lt.s32.totalorder %s35_s24, %s35_s24 }
  0x60   :  { %p1692_p7 = scmp.ne.s32.totalorder %s35_s24, %s1691_s12  ;;  %p1697_p9 = scmp.lt.s32.totalorder %s1691_s12, %s1691_s12 }
  0x62   :  { %p1698_p10 = por %p1697_p9, %p1696_p8 }
  0x64   :  { %p1699_p11 = pnand %p1698_p10, %p1692_p7 }
  0x66   :  { %1702 = shalt.err (!%p1699_p11)
}
  0x67   :  { %40 = dma.hbm_to_vmem [thread:$0]  %s2312_s27, 256, %s35_s24, [#allocation3], %s1827_s25, %s1827_s25, %s1828_s26  }
  0x68   :  { %s2313_s23 = sld [smem:[#allocation26_spill]] }
  0x6e   :  { %s1703_s3 = scalar_lea.hbm %s2313_s23, 256 }
  0x6f   :  { %p1704_p12 = scmp.ne.s32.totalorder %s2313_s23, %s1703_s3  ;;  %p1707_p13 = scmp.lt.u32.totalorder %s1703_s3, %s2313_s23 }
  0x71   :  { %p1709_p0 = pnand %p1707_p13, %p1704_p12 }
  0x73   :  { %1712 = shalt.err (!%p1709_p0)
}
  0x74   :  { %s1713_s20 = scalar_lea.vmem %s2008_s30, 256  ;;  %p1718_p2 = scmp.lt.s32.totalorder %s2008_s30, %s2008_s30 }
  0x75   :  { %p1714_p1 = scmp.ne.s32.totalorder %s2008_s30, %s1713_s20  ;;  %p1719_p3 = scmp.lt.s32.totalorder %s1713_s20, %s1713_s20 }
  0x77   :  { %p1720_p4 = por %p1719_p3, %p1718_p2 }
  0x79   :  { %p1721_p5 = pnand %p1720_p4, %p1714_p1 }
  0x7b   :  { %1724 = shalt.err (!%p1721_p5)
}
  0x7c   :  { %64 = dma.hbm_to_vmem [thread:$0]  %s2313_s23, 256, %s2008_s30, [#allocation6], %s1827_s25, %s1827_s25, %s1828_s26  }
  0x7d   :  { %s1833_s21 = smov [#allocation10]   ;;  %s1834_s12 = smov [#allocation13]  }
  0x7e   :  { %s82_s22 = sshll.u32 %s1833_s21, 4  ;;  %s110_s19 = sshll.u32 %s1834_s12, 4  ;;  %s83_s22 = int_to_ptr.vmem [resolvable:$true] %s82_s22  ;;  %s2045_s19 = int_to_ptr.vmem [resolvable:$true] %s110_s19 }
  0x7f   :  { %s1725_s29 = scalar_lea.hbm %s2288_s4, 512 }
  0x80   :  { %p1726_p6 = scmp.ne.s32.totalorder %s2288_s4, %s1725_s29  ;;  %p1729_p7 = scmp.lt.u32.totalorder %s1725_s29, %s2288_s4 }
  0x82   :  { %p1731_p8 = pnand %p1729_p7, %p1726_p6 }
  0x84   :  { %1734 = shalt.err (!%p1731_p8)
}
  0x85   :  { %s1735_s30 = scalar_lea.vmem %s83_s22, 512  ;;  %p1740_p10 = scmp.lt.s32.totalorder %s83_s22, %s83_s22 }
  0x86   :  { %p1736_p9 = scmp.ne.s32.totalorder %s83_s22, %s1735_s30  ;;  %p1741_p11 = scmp.lt.s32.totalorder %s1735_s30, %s1735_s30 }
  0x88   :  { %p1742_p12 = por %p1741_p11, %p1740_p10 }
  0x8a   :  { %p1743_p13 = pnand %p1742_p12, %p1736_p9 }
  0x8c   :  { %1746 = shalt.err (!%p1743_p13)
}
  0x8d   :  { %88 = dma.hbm_to_vmem [thread:$0]  %s2288_s4, 512, %s83_s22, [#allocation9], %s1827_s25, %s1827_s25, %s1828_s26  }
  0x8e   :  { %s1747_s27 = scalar_lea.hbm %s2292_s8, 512 }
  0x8f   :  { %p1748_p0 = scmp.ne.s32.totalorder %s2292_s8, %s1747_s27  ;;  %p1751_p1 = scmp.lt.u32.totalorder %s1747_s27, %s2292_s8 }
  0x91   :  { %p1753_p2 = pnand %p1751_p1, %p1748_p0 }
  0x93   :  { %1756 = shalt.err (!%p1753_p2)
}
  0x94   :  { %s1757_s29 = scalar_lea.vmem %s2045_s19, 512  ;;  %p1762_p4 = scmp.lt.s32.totalorder %s2045_s19, %s2045_s19 }
  0x95   :  { %p1758_p3 = scmp.ne.s32.totalorder %s2045_s19, %s1757_s29  ;;  %p1763_p5 = scmp.lt.s32.totalorder %s1757_s29, %s1757_s29 }
  0x97   :  { %p1764_p6 = por %p1763_p5, %p1762_p4 }
  0x99   :  { %p1765_p7 = pnand %p1764_p6, %p1758_p3 }
  0x9b   :  { %1768 = shalt.err (!%p1765_p7)
}
  0x9c   :  { %116 = dma.hbm_to_vmem [thread:$0]  %s2292_s8, 512, %s2045_s19, [#allocation12], %s1827_s25, %s1827_s25, %s1828_s26  }
  0x9d   :  { %s1835_s3 = smov [#allocation16]   ;;  %s1769_s30 = scalar_lea.hbm %s2299_s15, 512 }
  0x9e   :  { %s144_s28 = sshll.u32 %s1835_s3, 4  ;;  %p1770_p8 = scmp.ne.s32.totalorder %s2299_s15, %s1769_s30  ;;  %s145_s28 = int_to_ptr.vmem [resolvable:$true] %s144_s28 }
  0x9f   :  { %p1773_p9 = scmp.lt.u32.totalorder %s1769_s30, %s2299_s15 }
  0xa1   :  { %p1775_p10 = pnand %p1773_p9, %p1770_p8 }
  0xa3   :  { %1778 = shalt.err (!%p1775_p10)
}
  0xa4   :  { %s1779_s27 = scalar_lea.vmem %s145_s28, 512  ;;  %p1784_p12 = scmp.lt.s32.totalorder %s145_s28, %s145_s28 }
  0xa5   :  { %p1780_p11 = scmp.ne.s32.totalorder %s145_s28, %s1779_s27  ;;  %p1785_p13 = scmp.lt.s32.totalorder %s1779_s27, %s1779_s27 }
  0xa7   :  { %p1786_p0 = por %p1785_p13, %p1784_p12 }
  0xa9   :  { %p1787_p1 = pnand %p1786_p0, %p1780_p11 }
  0xab   :  { %1790 = shalt.err (!%p1787_p1)
}
  0xac   :  { %150 = dma.hbm_to_vmem [thread:$0]  %s2299_s15, 512, %s145_s28, [#allocation15], %s1827_s25, %s1827_s25, %s1828_s26  }
  0xad   :  { %1813 = dma.done.wait [#allocation3], 256  }
  0xae   :  { %1814 = vsyncadd [#allocation3], 4294967040 }
  0xaf   :  { %1815 = dma.done.wait [#allocation6], 512  }
  0xb0   :  { %1816 = vsyncadd [#allocation6], 4294966784 }
  0xb1   :  { %1817 = dma.done.wait [#allocation9], 768  }
  0xb2   :  { %1818 = vsyncadd [#allocation9], 4294966528 }
  0xb3   :  { %1819 = dma.done.wait [#allocation12], 1024  }
  0xb4   :  { %1820 = vsyncadd [#allocation12], 4294966272 }
  0xb5   :  { %1821 = dma.done.wait [#allocation15], 1024  }
  0xb6   :  { %1822 = vsyncadd [#allocation15], 4294966272  ;;  %v188_v0 = vld [vmem:[#allocation13] sm:$0xff]  ;;  %v189_v1 = vld [vmem:[#allocation13 + $0x8] sm:$0xff]  ;;  %vm208_vm0 = vcmask 261120   ;;  %s1836_s21 = smov 32  }
  0xb7   :  { %v190_v2 = vld [vmem:[#allocation13 + $0x10] sm:$0xff]  ;;  %v1521_v3 = vpack.i.bf16 %v189_v1, %v188_v0  ;;  %v191_v4 = vld [vmem:[#allocation13 + $0x18] sm:$0xff]  ;;  %v182_v5 = vld [vmem:[#allocation2] sm:$0xff]  ;;  %vm303_vm1 = vcmask 130048   ;;  %s1837_s28 = smov 96   ;;  %vm608_vm2 = vcmask 253952  }
  0xb8   :  { %v1526_v6 = vpack.i.bf16 %v191_v4, %v190_v2  ;;  %1367 = vmatprep.mubr.msk.f32.mxu0 %vm208_vm0, %v182_v5  ;;  %v184_v8 = vld [vmem:[#allocation10] sm:$0xff]  ;;  %v185_v9 = vld [vmem:[#allocation10 + $0x8] sm:$0xff]  ;;  %v186_v16 = vld [vmem:[#allocation10 + $0x10] sm:$0xff] }
  0xb9   :  { %1522 = vrot.lane.b32.xlu0 %v1521_v3, %s1836_s21  ;;  %v187_v17 = vld [vmem:[#allocation10 + $0x18] sm:$0xff]  ;;  %v183_v23 = vld [vmem:[#allocation2 + $0x8] sm:$0xff]  ;;  %v659_v24 = vld [vmem:[%s2293_s9 + $0x10] sm:$0xff] }
  0xba   :  { %v660_v25 = vld [vmem:[%s2293_s9 + $0x18] sm:$0xff]  ;;  %v2111_v26 = vld [vmem:[#allocation7] sm:$0xff]  ;;  %v658_v31 = vld [vmem:[%s2293_s9 + $0x8] sm:$0xff] }
  0xbb   :  { %v1541_v27 = vpack.i.bf16 %v660_v25, %v659_v24  ;;  %1374 = vmatprep.mubr.msk.f32.mxu1 %vm303_vm1, %v2111_v26  ;;  %v657_v30 = vld [vmem:[%s2293_s9] sm:$0xff]  ;;  %v2123_v35 = vld [vmem:[#allocation7 + $0x8] sm:$0xff]  ;;  %v385_v36 = vld [vmem:[#allocation8] sm:$0xff] }
  0xbc   :  { %v1536_v34 = vpack.i.bf16 %v658_v31, %v657_v30  ;;  %v483_v37 = vld [vmem:[#allocation14] sm:$0xff]  ;;  %v484_v38 = vld [vmem:[#allocation14 + $0x8] sm:$0xff]  ;;  %v485_v40 = vld [vmem:[#allocation14 + $0x10] sm:$0xff] }
  0xbd   :  { %1527 = vrot.lane.b32.xlu0 %v1526_v6, %s1836_s21  ;;  %v2129_v39 = vpack.c.bf16 %v484_v38, %v483_v37  ;;  %v486_v41 = vld [vmem:[#allocation14 + $0x18] sm:$0xff]  ;;  %v655_v49 = vld [vmem:[#allocation11 + $0x10] sm:$0xff]  ;;  %v653_v53 = vld [vmem:[#allocation11] sm:$0xff] }
  0xbe   :  { %v1471_v42 = vpack.c.bf16 %v486_v41, %v485_v40  ;;  %v656_v50 = vld [vmem:[#allocation11 + $0x18] sm:$0xff]  ;;  %v654_v54 = vld [vmem:[#allocation11 + $0x8] sm:$0xff]  ;;  %v651_v62 = vld [vmem:[#allocation5] sm:$0xff] }
  0xbf   :  { %v386_v59 = vld [vmem:[#allocation8 + $0x8] sm:$0xff]  ;;  %v1279_v2 = vld [vmem:[%s2290_s6] ss:$0 sm:$0xff] }
  0xc0   :  { %v652_v1 = vld [vmem:[#allocation5 + $0x8] sm:$0xff] }
  0xc1   :  { %1542 = vrot.lane.b32.xlu0 %v1541_v27, %s1836_s21 }
 0x12b   :  { %v1523_v7 = vpop.permute.xlu0 %1522 }
 0x12c   :  { %v1525_v10 = vunpack.i.h.bf16 %v1523_v7  ;;  %v1524_v11 = vunpack.i.l.bf16 %v1523_v7  ;;  %v1282_v7 = vld [vmem:[%s2294_s10] ss:$0 sm:$0xff] }
 0x12e   :  { %v209_v12 = vsel %vm208_vm0, %v184_v8, %v1524_v11  ;;  %v210_v13 = vsel %vm208_vm0, %v185_v9, %v1525_v10 }
 0x12f   :  { %v1528_v14 = vpop.permute.xlu0 %1527  ;;  %v1451_v15 = vpack.c.bf16 %v210_v13, %v209_v12 }
 0x130   :  { %v1530_v18 = vunpack.i.h.bf16 %v1528_v14  ;;  %v1529_v19 = vunpack.i.l.bf16 %v1528_v14 }
 0x131   :  { %1452 = vmatprep.subr.bf16.mxu0 %v1451_v15 }
 0x132   :  { %1454 = vmatpush3.bf16.msra.mxu0 %v1451_v15  ;;  %v211_v20 = vsel %vm208_vm0, %v186_v16, %v1529_v19  ;;  %v212_v21 = vsel %vm208_vm0, %v187_v17, %v1530_v18  ;;  %v2172_v16 = vld [vmem:[%s2297_s13] ss:$0 sm:$0xff] }
 0x133   :  { %v1455_v22 = vpack.c.bf16 %v212_v21, %v211_v20  ;;  %v1543_v43 = vpop.permute.xlu0 %1542 }
 0x134   :  { %v1545_v47 = vunpack.i.h.bf16 %v1543_v43  ;;  %v1544_v48 = vunpack.i.l.bf16 %v1543_v43 }
 0x135   :  { %1456 = vmatprep.subr.bf16.mxu0 %v1455_v22 }
 0x136   :  { %1458 = vmatpush3.bf16.msra.mxu0 %v1455_v22  ;;  %v679_v57 = vsel %vm208_vm0, %v655_v49, %v1544_v48  ;;  %v680_v58 = vsel %vm208_vm0, %v656_v50, %v1545_v47 }
 0x137   :  { %1468 = vmatprep.subr.bf16.mxu0 %v2129_v39  ;;  %v1479_v0 = vpack.c.bf16 %v680_v58, %v679_v57 }
 0x139   :  { %1368 = vmatmul.mubr.msk.f32.vlgmr.msra.gmra.mrb[0].mxu0 %vm208_vm0, %v183_v23 }
 0x13a   :  { %1470 = vmatpush3.bf16.msra.mxu0 %v2129_v39 }
 0x13b   :  { %1472 = vmatprep.subr.bf16.mxu0 %v1471_v42 }
 0x13e   :  { %1474 = vmatpush3.bf16.msra.mxu0 %v1471_v42 }
 0x20c   :  { %v1369_v28 = vpop.f32.mrb[0].mxu0 }
 0x20d   :  { %v285_v29 = vpop.f32.mrb[1].mxu0 }
 0x20e   :  { %v1531_v32 = vpack.i.bf16 %v1369_v28, %v285_v29  ;;  %v1459_v33 = vpack.c.bf16 %v1369_v28, %v285_v29 }
 0x210   :  { %1532 = vrot.lane.b32.xlu1 %v1531_v32, %s1837_s28  ;;  %1460 = vmatprep.subr.bf16.mxu1 %v1459_v33  ;;  %v2181_v32 = vld [vmem:[%s2298_s14] sm:$0x1] }
 0x211   :  { %1462 = vmatpush3.bf16.msra.mxu1 %v1459_v33 }
 0x214   :  { %1537 = vrot.lane.b32.xlu1 %v1536_v34, %s1836_s21  ;;  %1375 = vmatmul.mubr.msk.f32.vlgmr.msra.gmra.mrb[0].mxu1 %vm303_vm1, %v2123_v35 }
 0x215   :  { %1381 = vmatprep.mubr.msk.f32.mxu1 %vm303_vm1, %v385_v36 }
 0x282   :  { %v1533_v44 = vpop.permute.xlu1 %1532 }
 0x283   :  { %v1535_v45 = vunpack.i.h.bf16 %v1533_v44  ;;  %v1534_v46 = vunpack.i.l.bf16 %v1533_v44 }
 0x285   :  { %v1463_v51 = vpack.c.bf16 %v1535_v45, %v1534_v46  ;;  %v1292_v45 = vld [vmem:[%s2291_s7] ss:$0 sm:$0xff] }
 0x286   :  { %v1538_v52 = vpop.permute.xlu1 %1537 }
 0x287   :  { %v1540_v55 = vunpack.i.h.bf16 %v1538_v52  ;;  %v1539_v56 = vunpack.i.l.bf16 %v1538_v52  ;;  %1464 = vmatprep.subr.bf16.mxu1 %v1463_v51 }
 0x288   :  { %1466 = vmatpush3.bf16.msra.mxu1 %v1463_v51 }
 0x289   :  { %v677_v60 = vsel %vm208_vm0, %v653_v53, %v1539_v56  ;;  %v678_v61 = vsel %vm208_vm0, %v654_v54, %v1540_v55 }
 0x28a   :  { %v1475_v63 = vpack.c.bf16 %v678_v61, %v677_v60 }
 0x28b   :  { %1382 = vmatmul.mubr.msk.f32.vlgmr.msra.gmra.mrb[2].mxu1 %vm303_vm1, %v386_v59 }
 0x28c   :  { %1476 = vmatprep.subr.bf16.mxu1 %v1475_v63  ;;  %1406 = vmatprep.mubr.msk.f32.mxu1 %vm208_vm0, %v651_v62 }
 0x28d   :  { %1478 = vmatpush3.bf16.msra.mxu1 %v1475_v63  ;;  %v1088_v63 = vld [vmem:[#allocation16] sm:$0xff] }
 0x28e   :  { %1480 = vmatprep.subr.bf16.mxu1 %v1479_v0 }
 0x291   :  { %1482 = vmatpush3.bf16.msra.mxu1 %v1479_v0  ;;  %v1089_v0 = vld [vmem:[#allocation16 + $0x8] sm:$0xff] }
 0x294   :  { %1407 = vmatmul.mubr.msk.f32.vlgmr.msra.gmra.mrb[4].mxu1 %vm208_vm0, %v652_v1  ;;  %v1090_v1 = vld [vmem:[#allocation16 + $0x10] sm:$0xff] }
 0x295   :  { %1413 = vmatprep.mubr.msk.f32.mxu1 %vm303_vm1, %v385_v36 }
 0x2e7   :  { %v1376_v3 = vpop.f32.mrb[0].mxu1 }
 0x2e8   :  { %v2144_v4 = vadd.f32 %v1376_v3, %v1279_v2  ;;  %v376_v5 = vpop.f32.mrb[1].mxu1  ;;  %v1091_v3 = vld [vmem:[#allocation16 + $0x18] sm:$0xff] }
 0x2e9   :  { %v2146_v6 = vadd.f32 %v1279_v2, %v376_v5  ;;  %v1499_v2 = vpack.c.bf16 %v1089_v0, %v1088_v63  ;;  %v1503_v5 = vpack.c.bf16 %v1091_v3, %v1090_v1 }
 0x2eb   :  { %1392 = vmatprep.mubr.msk.f32.mxu0 %vm208_vm0, %v2146_v6 }
 0x2ec   :  { %1393 = vmatmul.mubr.msk.f32.vlgmr.msra.gmra.mrb[2].mxu0 %vm208_vm0, %v2144_v4 }
 0x35e   :  { %v1383_v8 = vpop.f32.mrb[2].mxu1 }
 0x35f   :  { %v2155_v9 = vadd.f32 %v1383_v8, %v1282_v7  ;;  %v474_v10 = vpop.f32.mrb[3].mxu1 }
 0x360   :  { %v2157_v11 = vadd.f32 %v1282_v7, %v474_v10  ;;  %v1295_v7 = vld [vmem:[%s2295_s11] ss:$0 sm:$0xff] }
 0x362   :  { %1395 = vmatprep.mubr.msk.f32.mxu0 %vm208_vm0, %v2157_v11 }
 0x363   :  { %1396 = vmatmul.mubr.msk.f32.gmra.mrb[4].mxu0 %vm208_vm0, %v2155_v9 }
 0x364   :  { %1420 = vmatprep.mubr.msk.f32.mxu0 %vm303_vm1, %v2111_v26 }
 0x367   :  { %v1408_v12 = vpop.f32.mrb[4].mxu1 }
 0x368   :  { %v753_v13 = vpop.f32.mrb[5].mxu1 }
 0x369   :  { %v1546_v14 = vpack.i.bf16 %v1408_v12, %v753_v13  ;;  %v1483_v15 = vpack.c.bf16 %v1408_v12, %v753_v13 }
 0x36b   :  { %1547 = vrot.lane.b32.xlu1 %v1546_v14, %s1837_s28  ;;  %1484 = vmatprep.subr.bf16.mxu1 %v1483_v15 }
 0x36c   :  { %1486 = vmatpush3.bf16.msra.mxu1 %v1483_v15 }
 0x36d   :  { %1492 = vmatprep.subr.bf16.mxu1 %v2129_v39 }
 0x36f   :  { %1414 = vmatmul.mubr.msk.f32.vlgmr.msra.gmra.mrb[6].mxu1 %vm303_vm1, %v386_v59 }
 0x370   :  { %1494 = vmatpush3.bf16.msra.mxu1 %v2129_v39 }
 0x371   :  { %1496 = vmatprep.subr.bf16.mxu1 %v1471_v42 }
 0x374   :  { %1498 = vmatpush3.bf16.msra.mxu1 %v1471_v42 }
 0x3bf   :  { %v1394_v17 = vpop.f32.mrb[2].mxu0 }
 0x3c0   :  { %v579_v18 = vadd.f32 %v1394_v17, %v2172_v16  ;;  %v573_v19 = vpop.f32.mrb[3].mxu0 }
 0x3c1   :  { %v574_v20 = vadd.f32 %v2172_v16, %v573_v19 }
 0x3c2   :  { %1551 = vtanh.f32 %v579_v18 }
 0x3c3   :  { %1553 = vtanh.f32 %v574_v20 }
 0x3cc   :  { %v1552_v21 = vpop.eup %1551 }
 0x3cd   :  { %v1554_v22 = vpop.eup %1553  ;;  %v597_v23 = vsel %vm208_vm0, %v1552_v21, 0.0 }
 0x3ce   :  { %v596_v24 = vsel %vm208_vm0, %v1554_v22, 0.0 }
 0x3cf   :  { %v598_v25 = vadd.f32 %v597_v23, %v596_v24 }
 0x3d1   :  { %v599_v26 = vrot.slane %v598_v25, 4 }
 0x3d3   :  { %v600_v27 = vadd.f32 %v599_v26, %v598_v25  ;;  %v637_v25 = vlaneseq }
 0x3d5   :  { %v601_v28 = vrot.slane %v600_v27, 2  ;;  %v638_v26 = vshrl.u32 %v637_v25, 7 }
 0x3d7   :  { %v602_v29 = vadd.f32 %v601_v28, %v600_v27  ;;  %v2215_v27 = vsub.s32 0, %v638_v26 }
 0x3d9   :  { %v603_v30 = vrot.slane %v602_v29, 1 }
 0x3db   :  { %v604_v31 = vadd.f32 %v603_v30, %v602_v29 }
 0x3dd   :  { %v1548_v33 = vpop.permute.xlu1 %1547  ;;  %v606_v34 = vmul.f32 0.0625, %v604_v31 }
 0x3de   :  { %v1550_v36 = vunpack.i.h.bf16 %v1548_v33  ;;  %v1549_v37 = vunpack.i.l.bf16 %v1548_v33 }
 0x3df   :  { %v607_v38 = vmul.f32 %v606_v34, %v2181_v32 }
 0x3e0   :  { %v1487_v39 = vpack.c.bf16 %v1550_v36, %v1549_v37 }
 0x3e1   :  { %v609_v40 = vsel %vm608_vm2, %v607_v38, 0.0 }
 0x3e2   :  { %1488 = vmatprep.subr.bf16.mxu0 %v1487_v39  ;;  %610 = vadd.xlane.f32.xlu0 %v609_v40 }
 0x3e3   :  { %1490 = vmatpush3.bf16.msra.mxu0 %v1487_v39 }
 0x3e4   :  { %1500 = vmatprep.subr.bf16.mxu0 %v1499_v2 }
 0x3e6   :  { %1421 = vmatmul.mubr.msk.f32.vlgmr.msra.gmra.mrb[6].mxu0 %vm303_vm1, %v2123_v35 }
 0x3e7   :  { %1502 = vmatpush3.bf16.msra.mxu0 %v1499_v2 }
 0x3e8   :  { %1504 = vmatprep.subr.bf16.mxu0 %v1503_v5 }
 0x3eb   :  { %1506 = vmatpush3.bf16.msra.mxu0 %v1503_v5 }
 0x436   :  { %v1397_v41 = vpop.f32.mrb[4].mxu0 }
 0x437   :  { %v589_v42 = vadd.f32 %v1397_v41, %v2172_v16  ;;  %v583_v43 = vpop.f32.mrb[5].mxu0 }
 0x438   :  { %v584_v44 = vadd.f32 %v2172_v16, %v583_v43 }
 0x439   :  { %1555 = vtanh.f32 %v589_v42 }
 0x43a   :  { %1557 = vtanh.f32 %v584_v44 }
 0x442   :  { %v1415_v46 = vpop.f32.mrb[6].mxu1 }
 0x443   :  { %v1556_v47 = vpop.eup %1555  ;;  %v2192_v48 = vadd.f32 %v1415_v46, %v1292_v45  ;;  %v835_v49 = vpop.f32.mrb[7].mxu1 }
 0x444   :  { %v1558_v50 = vpop.eup %1557  ;;  %v613_v35 = vsel %vm208_vm0, %v1556_v47, 0.0  ;;  %v2195_v51 = vadd.f32 %v1292_v45, %v835_v49 }
 0x445   :  { %v612_v52 = vsel %vm208_vm0, %v1558_v50, 0.0 }
 0x446   :  { %v614_v53 = vadd.f32 %v613_v35, %v612_v52  ;;  %1431 = vmatprep.mubr.msk.f32.mxu1 %vm208_vm0, %v2195_v51 }
 0x447   :  { %1432 = vmatmul.mubr.msk.f32.vlgmr.msra.gmra.mrb[8].mxu1 %vm208_vm0, %v2192_v48 }
 0x448   :  { %v615_v54 = vrot.slane %v614_v53, 4 }
 0x44a   :  { %v616_v55 = vadd.f32 %v615_v54, %v614_v53 }
 0x44c   :  { %v617_v56 = vrot.slane %v616_v55, 2 }
 0x44e   :  { %v618_v57 = vadd.f32 %v617_v56, %v616_v55 }
 0x450   :  { %v619_v58 = vrot.slane %v618_v57, 1 }
 0x452   :  { %v620_v59 = vadd.f32 %v619_v58, %v618_v57 }
 0x454   :  { %v621_v60 = vmul.f32 0.0625, %v620_v59 }
 0x456   :  { %v622_v61 = vmul.f32 %v621_v60, %v2181_v32 }
 0x458   :  { %v623_v62 = vsel %vm608_vm2, %v622_v61, 0.0 }
 0x459   :  { %624 = vadd.xlane.f32.xlu1 %v623_v62 }
 0x46f   :  { %v611_v14 = vpop.xlane.xlu0 %610 }
 0x4b9   :  { %v1422_v8 = vpop.f32.mrb[6].mxu0 }
 0x4ba   :  { %v925_v10 = vpop.f32.mrb[7].mxu0  ;;  %v2209_v13 = vadd.f32 %v1422_v8, %v1295_v7 }
 0x4bb   :  { %v2207_v12 = vadd.f32 %v1295_v7, %v925_v10 }
 0x4bd   :  { %1434 = vmatprep.mubr.msk.f32.mxu1 %vm208_vm0, %v2207_v12 }
 0x4be   :  { %1435 = vmatmul.mubr.msk.f32.gmra.mrb[10].mxu1 %vm208_vm0, %v2209_v13 }
 0x4e6   :  { %v625_v15 = vpop.xlane.xlu1 %624 }
 0x4e7   :  { %v626_v17 = vmax.f32 %v611_v14, %v625_v15 }
 0x4e9   :  { %v627_v18 = vsub.f32 %v611_v14, %v626_v17  ;;  %v630_v19 = vsub.f32 %v625_v15, %v626_v17  ;;  %v1302_v15 = vld [vmem:[%s2300_s16] ss:$0 sm:$0xff] }
 0x4eb   :  { %v628_v20 = vmul.f32 1.442695, %v627_v18  ;;  %v631_v21 = vmul.f32 1.442695, %v630_v19 }
 0x4ed   :  { %1559 = vpow2.f32 %v628_v20 }
 0x4ee   :  { %1561 = vpow2.f32 %v631_v21 }
 0x4f7   :  { %v1560_v22 = vpop.eup %1559 }
 0x4f8   :  { %v1562_v23 = vpop.eup %1561 }
 0x4f9   :  { %v633_v24 = vadd.f32 %v1562_v23, %v1560_v22 }
 0x4fb   :  { %1563 = vrcp.f32 %v633_v24 }
 0x505   :  { %v1564_v28 = vpop.eup %1563 }
 0x506   :  { %v635_v29 = vmul.f32 %v1564_v28, %v1560_v22  ;;  %v636_v30 = vmul.f32 %v1564_v28, %v1562_v23 }
 0x508   :  { %v640_v31 = vrot.slane %v635_v29, %v2215_v27  ;;  %v646_v33 = vrot.slane %v636_v30, %v2215_v27 }
 0x50a   :  { %v641_v34 = vmul.f32 %v640_v31, %v2146_v6  ;;  %v642_v36 = vmul.f32 %v640_v31, %v2144_v4  ;;  %v647_v37 = vmul.f32 %v646_v33, %v2157_v11  ;;  %v648_v38 = vmul.f32 %v646_v33, %v2155_v9  ;;  %v1093_v33 = vld [vmem:[%s2301_s17] sm:$0x1]  ;;  %s1838_s17 = smov [#allocation17]  }
 0x50b   :  { %s1261_s8 = sshll.u32 %s1838_s17, 4  ;;  %s1262_s8 = int_to_ptr.vmem [resolvable:$true] %s1261_s8 }
 0x50c   :  { %v2223_v39 = vadd.f32 %v647_v37, %v641_v34  ;;  %v2225_v40 = vadd.f32 %v648_v38, %v642_v36  ;;  %s1791_s19 = scalar_lea.vmem %s1262_s8, 256  ;;  %p1796_p3 = scmp.lt.s32.totalorder %s1262_s8, %s1262_s8 }
 0x50d   :  { %p1792_p2 = scmp.ne.s32.totalorder %s1262_s8, %s1791_s19  ;;  %p1797_p4 = scmp.lt.s32.totalorder %s1791_s19, %s1791_s19 }
 0x50e   :  { %1445 = vmatprep.mubr.msk.f32.mxu0 %vm208_vm0, %v2223_v39 }
 0x50f   :  { %1446 = vmatmul.mubr.msk.f32.vlgmr.msra.gmra.mrb[8].mxu0 %vm208_vm0, %v2225_v40  ;;  %p1798_p5 = por %p1797_p4, %p1796_p3 }
 0x511   :  { %p1799_p6 = pnand %p1798_p5, %p1792_p2 }
 0x51a   :  { %v1433_v41 = vpop.f32.mrb[8].mxu1 }
 0x51b   :  { %v1018_v42 = vadd.f32 %v1433_v41, %v2172_v16  ;;  %v1012_v6 = vpop.f32.mrb[9].mxu1 }
 0x51c   :  { %v1013_v4 = vadd.f32 %v2172_v16, %v1012_v6 }
 0x51d   :  { %1565 = vtanh.f32 %v1018_v42 }
 0x51e   :  { %1567 = vtanh.f32 %v1013_v4 }
 0x527   :  { %v1566_v11 = vpop.eup %1565 }
 0x528   :  { %v1568_v9 = vpop.eup %1567  ;;  %v1036_v43 = vsel %vm208_vm0, %v1566_v11, 0.0 }
 0x529   :  { %v1035_v44 = vsel %vm208_vm0, %v1568_v9, 0.0 }
 0x52a   :  { %v1037_v45 = vadd.f32 %v1036_v43, %v1035_v44 }
 0x52c   :  { %v1038_v46 = vrot.slane %v1037_v45, 4 }
 0x52e   :  { %v1039_v47 = vadd.f32 %v1038_v46, %v1037_v45 }
 0x530   :  { %v1040_v49 = vrot.slane %v1039_v47, 2 }
 0x532   :  { %v1041_v50 = vadd.f32 %v1040_v49, %v1039_v47 }
 0x534   :  { %v1042_v35 = vrot.slane %v1041_v50, 1 }
 0x536   :  { %v1043_v52 = vadd.f32 %v1042_v35, %v1041_v50 }
 0x538   :  { %v1044_v53 = vmul.f32 0.0625, %v1043_v52 }
 0x53a   :  { %v1045_v54 = vmul.f32 %v1044_v53, %v2181_v32 }
 0x53c   :  { %v1046_v55 = vsel %vm608_vm2, %v1045_v54, 0.0 }
 0x53d   :  { %1047 = vadd.xlane.f32.xlu0 %v1046_v55 }
 0x591   :  { %v1436_v56 = vpop.f32.mrb[10].mxu1 }
 0x592   :  { %v1028_v57 = vadd.f32 %v1436_v56, %v2172_v16  ;;  %v1022_v58 = vpop.f32.mrb[11].mxu1 }
 0x593   :  { %v1023_v59 = vadd.f32 %v2172_v16, %v1022_v58 }
 0x594   :  { %1569 = vtanh.f32 %v1028_v57 }
 0x595   :  { %1571 = vtanh.f32 %v1023_v59 }
 0x59e   :  { %v1570_v60 = vpop.eup %1569 }
 0x59f   :  { %v1572_v61 = vpop.eup %1571  ;;  %v1050_v62 = vsel %vm208_vm0, %v1570_v60, 0.0 }
 0x5a0   :  { %v1049_v63 = vsel %vm208_vm0, %v1572_v61, 0.0 }
 0x5a1   :  { %v1051_v0 = vadd.f32 %v1050_v62, %v1049_v63 }
 0x5a3   :  { %v1052_v1 = vrot.slane %v1051_v0, 4 }
 0x5a5   :  { %v1053_v2 = vadd.f32 %v1052_v1, %v1051_v0 }
 0x5a7   :  { %v1054_v3 = vrot.slane %v1053_v2, 2 }
 0x5a9   :  { %v1055_v5 = vadd.f32 %v1054_v3, %v1053_v2 }
 0x5ab   :  { %v1056_v7 = vrot.slane %v1055_v5, 1 }
 0x5ad   :  { %v1057_v8 = vadd.f32 %v1056_v7, %v1055_v5 }
 0x5af   :  { %v1058_v10 = vmul.f32 0.0625, %v1057_v8 }
 0x5b1   :  { %v1059_v14 = vmul.f32 %v1058_v10, %v2181_v32 }
 0x5b3   :  { %v1060_v16 = vsel %vm608_vm2, %v1059_v14, 0.0 }
 0x5b4   :  { %1061 = vadd.xlane.f32.xlu0 %v1060_v16 }
 0x5ca   :  { %v1048_v38 = vpop.xlane.xlu0 %1047 }
 0x5e2   :  { %v1447_v17 = vpop.f32.mrb[8].mxu0 }
 0x5e3   :  { %v1184_v18 = vadd.f32 %v1447_v17, %v1302_v15  ;;  %v1178_v19 = vpop.f32.mrb[9].mxu0 }
 0x5e4   :  { %v1179_v20 = vadd.f32 %v1302_v15, %v1178_v19 }
 0x5e5   :  { %1573 = vtanh.f32 %v1184_v18 }
 0x5e6   :  { %1575 = vtanh.f32 %v1179_v20 }
 0x5ef   :  { %v1574_v21 = vpop.eup %1573 }
 0x5f0   :  { %v1576_v22 = vpop.eup %1575  ;;  %v1202_v23 = vsel %vm208_vm0, %v1574_v21, 0.0 }
 0x5f1   :  { %v1201_v24 = vsel %vm208_vm0, %v1576_v22, 0.0 }
 0x5f2   :  { %v1203_v32 = vadd.f32 %v1202_v23, %v1201_v24 }
 0x5f4   :  { %v1204_v25 = vrot.slane %v1203_v32, 4 }
 0x5f6   :  { %v1205_v26 = vadd.f32 %v1204_v25, %v1203_v32 }
 0x5f8   :  { %v1206_v28 = vrot.slane %v1205_v26, 2 }
 0x5fa   :  { %v1207_v29 = vadd.f32 %v1206_v28, %v1205_v26 }
 0x5fc   :  { %v1208_v30 = vrot.slane %v1207_v29, 1 }
 0x5fe   :  { %v1209_v31 = vadd.f32 %v1208_v30, %v1207_v29 }
 0x600   :  { %v1210_v34 = vmul.f32 0.0625, %v1209_v31 }
 0x602   :  { %v1211_v36 = vmul.f32 %v1210_v34, %v1093_v33 }
 0x604   :  { %v1212_v37 = vsel %vm608_vm2, %v1211_v36, 0.0 }
 0x605   :  { %1213 = vadd.xlane.f32.xlu1 %v1212_v37 }
 0x641   :  { %v1062_v41 = vpop.xlane.xlu0 %1061 }
 0x642   :  { %v1063_v42 = vmax.f32 %v1048_v38, %v1062_v41 }
 0x644   :  { %v1064_v6 = vsub.f32 %v1048_v38, %v1063_v42  ;;  %v1067_v4 = vsub.f32 %v1062_v41, %v1063_v42 }
 0x646   :  { %v1065_v11 = vmul.f32 1.442695, %v1064_v6  ;;  %v1068_v9 = vmul.f32 1.442695, %v1067_v4 }
 0x648   :  { %1577 = vpow2.f32 %v1065_v11 }
 0x649   :  { %1579 = vpow2.f32 %v1068_v9 }
 0x652   :  { %v1578_v43 = vpop.eup %1577 }
 0x653   :  { %v1580_v44 = vpop.eup %1579 }
 0x654   :  { %v1070_v45 = vadd.f32 %v1580_v44, %v1578_v43 }
 0x656   :  { %1581 = vrcp.f32 %v1070_v45 }
 0x660   :  { %v1582_v46 = vpop.eup %1581 }
 0x661   :  { %v1072_v47 = vmul.f32 %v1582_v46, %v1578_v43  ;;  %v1073_v49 = vmul.f32 %v1582_v46, %v1580_v44 }
 0x663   :  { %v1077_v50 = vrot.slane %v1072_v47, %v2215_v27  ;;  %v1083_v35 = vrot.slane %v1073_v49, %v2215_v27 }
 0x665   :  { %v1078_v52 = vmul.f32 %v1077_v50, %v2195_v51  ;;  %v1084_v53 = vmul.f32 %v1083_v35, %v2207_v12  ;;  %v1079_v54 = vmul.f32 %v1077_v50, %v2192_v48  ;;  %v1085_v55 = vmul.f32 %v1083_v35, %v2209_v13 }
 0x667   :  { %v1086_v56 = vadd.f32 %v1084_v53, %v1078_v52  ;;  %v1087_v57 = vadd.f32 %v1085_v55, %v1079_v54 }
 0x669   :  { %1448 = vmatprep.mubr.msk.f32.mxu0 %vm208_vm0, %v1086_v56 }
 0x66a   :  { %1449 = vmatmul.mubr.msk.f32.gmra.mrb[10].mxu0 %vm208_vm0, %v1087_v57 }
 0x692   :  { %v1214_v14 = vpop.xlane.xlu1 %1213 }
 0x73d   :  { %v1450_v58 = vpop.f32.mrb[10].mxu0 }
 0x73e   :  { %v1194_v59 = vadd.f32 %v1450_v58, %v1302_v15  ;;  %v1188_v60 = vpop.f32.mrb[11].mxu0 }
 0x73f   :  { %v1189_v61 = vadd.f32 %v1302_v15, %v1188_v60 }
 0x740   :  { %1583 = vtanh.f32 %v1194_v59 }
 0x741   :  { %1585 = vtanh.f32 %v1189_v61 }
 0x74a   :  { %v1584_v62 = vpop.eup %1583 }
 0x74b   :  { %v1586_v51 = vpop.eup %1585  ;;  %v1216_v12 = vsel %vm208_vm0, %v1584_v62, 0.0 }
 0x74c   :  { %v1215_v48 = vsel %vm208_vm0, %v1586_v51, 0.0 }
 0x74d   :  { %v1217_v63 = vadd.f32 %v1216_v12, %v1215_v48 }
 0x74f   :  { %v1218_v13 = vrot.slane %v1217_v63, 4 }
 0x751   :  { %v1219_v0 = vadd.f32 %v1218_v13, %v1217_v63 }
 0x753   :  { %v1220_v1 = vrot.slane %v1219_v0, 2 }
 0x755   :  { %v1221_v2 = vadd.f32 %v1220_v1, %v1219_v0 }
 0x757   :  { %v1222_v3 = vrot.slane %v1221_v2, 1 }
 0x759   :  { %v1223_v5 = vadd.f32 %v1222_v3, %v1221_v2 }
 0x75b   :  { %v1224_v7 = vmul.f32 0.0625, %v1223_v5 }
 0x75d   :  { %v1225_v8 = vmul.f32 %v1224_v7, %v1093_v33 }
 0x75f   :  { %v1226_v10 = vsel %vm608_vm2, %v1225_v8, 0.0 }
 0x760   :  { %1227 = vadd.xlane.f32.xlu0 %v1226_v10 }
 0x7ed   :  { %v1228_v16 = vpop.xlane.xlu0 %1227 }
 0x7ee   :  { %v1229_v15 = vmax.f32 %v1214_v14, %v1228_v16 }
 0x7f0   :  { %v1230_v17 = vsub.f32 %v1214_v14, %v1229_v15  ;;  %v1233_v18 = vsub.f32 %v1228_v16, %v1229_v15 }
 0x7f2   :  { %v1231_v19 = vmul.f32 1.442695, %v1230_v17  ;;  %v1234_v20 = vmul.f32 1.442695, %v1233_v18 }
 0x7f4   :  { %1587 = vpow2.f32 %v1231_v19 }
 0x7f5   :  { %1589 = vpow2.f32 %v1234_v20 }
 0x7fe   :  { %v1588_v21 = vpop.eup %1587 }
 0x7ff   :  { %v1590_v22 = vpop.eup %1589 }
 0x800   :  { %v1236_v23 = vadd.f32 %v1590_v22, %v1588_v21 }
 0x802   :  { %1591 = vrcp.f32 %v1236_v23 }
 0x80c   :  { %v1592_v24 = vpop.eup %1591 }
 0x80d   :  { %v1239_v32 = vmul.f32 %v1592_v24, %v1590_v22  ;;  %v1238_v25 = vmul.f32 %v1592_v24, %v1588_v21 }
 0x80f   :  { %v1243_v26 = vrot.slane %v1238_v25, %v2215_v27  ;;  %v1249_v28 = vrot.slane %v1239_v32, %v2215_v27 }
 0x811   :  { %v1244_v29 = vmul.f32 %v1243_v26, %v2223_v39  ;;  %v1245_v30 = vmul.f32 %v1243_v26, %v2225_v40  ;;  %v1250_v31 = vmul.f32 %v1249_v28, %v1086_v56  ;;  %v1251_v33 = vmul.f32 %v1249_v28, %v1087_v57 }
 0x813   :  { %v1252_v34 = vadd.f32 %v1250_v31, %v1244_v29  ;;  %v1253_v36 = vadd.f32 %v1251_v33, %v1245_v30 }
 0x815   :  { %1254 = vst.msk [vmem:[#allocation17] sm:$0xff] %vm208_vm0, %v1252_v34  ;;  %1255 = vst.msk [vmem:[#allocation17 + $0x8] sm:$0xff] %vm208_vm0, %v1253_v36 }
 0x816   :  { %1802 = shalt.err (!%p1799_p6)
}
 0x817   :  { %s2314_s12 = sld [smem:[#allocation27_spill]] }
 0x81d   :  { %s1803_s2 = scalar_lea.hbm %s2314_s12, 256 }
 0x81e   :  { %p1804_p7 = scmp.ne.s32.totalorder %s2314_s12, %s1803_s2  ;;  %p1807_p8 = scmp.lt.u32.totalorder %s1803_s2, %s2314_s12 }
 0x820   :  { %p1809_p9 = pnand %p1807_p8, %p1804_p7 }
 0x822   :  { %1812 = shalt.err (!%p1809_p9)
}
 0x823   :  { %1267 = dma.vmem_to_hbm [thread:$0]  %s1262_s8, 256, %s2314_s12, [#allocation4], %s1827_s25, %s1827_s25, %s1828_s26  }
 0x824   :  { %1823 = dma.done.wait [#allocation4], 256  }
 0x825   :  { %1824 = vsyncadd [#allocation4], 4294967040 }
 0x826   :  { %1271 = vsyncpa [#allocation3], 1 }
 0x827   :  { %1272 = vsyncpa [#allocation6], 1 }
 0x828   :  { %1273 = vsyncpa [#allocation9], 1 }
 0x829   :  { %1274 = vsyncpa [#allocation12], 1 }
 0x82a   :  { %1275 = vsyncpa [#allocation15], 1 }
 0x82b   :  { %1276 = vsyncpa [#allocation4], 1 }

</bundles_post_ra>
